<compile_context>
chip_gen: v7x
topology: tpu7x:2x2x1
jax: 0.10.0
libtpu: 0.0.40
codegen_flags: <defaults>
</compile_context>

<pallas_src>
import functools

import jax
import jax.numpy as jnp
from jax.experimental import pallas as pl
from jax.experimental.pallas import tpu as pltpu  # noqa: F401  (TPU backend)

OUT_DIM = 300   # hard-coded in the module: nn.Linear(2 * embedding_dim, 300)
OUT_PAD = 384   # padded to a multiple of 128 for lane-dense MXU / stores
_EPS = 1e-8     # torch.nn.CosineSimilarity default eps


def _fused_kernel(x_ref, props_ref, v_ref, w_ref, b_ref, o_ref):
    """All six attention branches + both cosine similarities, fused.

    x_ref:     (6*B, S, E)  rows: [res0 | res1 | dom0 | dom1 | rng0 | rng1] x B
    props_ref: (2, B, E)    slot-0 / token-0 embedding per side
    v_ref:     (1, S-1)     learned mixing vector self.v
    w_ref:     (2E, OUT_PAD) zero-padded Linear weight (input-major: x @ W + b)
    b_ref:     (1, OUT_PAD)  zero-padded Linear bias
    o_ref:     (B, 2)       column 0: entity cosine, column 1: prop cosine
    """
    x = x_ref[...]
    GB, S, E = x.shape
    B = GB // 6

    node = x[:, 0, :]                                    # (GB, E)
    nb = x[:, 1:, :]                                     # (GB, S-1, E)

    # att_weights = bmm(neighbours, node^T) -> (GB, S-1)
    att = jnp.sum(nb * node[:, None, :], axis=-1)

    # masked_softmax: entries that are exactly 0 get a -9999 additive mask.
    mask = (att != 0.0).astype(jnp.float32)
    logits = att + (mask - 1.0) * 9999.0
    m = jnp.max(logits, axis=-1, keepdims=True)
    e = jnp.exp(logits - m)
    p = e * pl.reciprocal(jnp.sum(e, axis=-1, keepdims=True), approx=True)

    # context = matmul(v, att_weights * neighbours): fold v into p first.
    pv = p * v_ref[...]                                  # (GB, S-1)
    context = jnp.sum(pv[:, :, None] * nb, axis=1)       # (GB, E)

    # Linear on concat(node, context): split W to avoid an in-kernel lane concat.
    w = w_ref[...]
    out = (jnp.dot(node, w[:E, :], preferred_element_type=jnp.float32)
           + jnp.dot(context, w[E:, :], preferred_element_type=jnp.float32)
           + b_ref[...])                                 # (GB, OUT_PAD); cols >= 300 are 0

    r0, r1 = out[0 * B:1 * B], out[1 * B:2 * B]          # entity results
    d0, d1 = out[2 * B:3 * B], out[3 * B:4 * B]          # domains
    g0, g1 = out[4 * B:5 * B], out[5 * B:6 * B]          # ranges
    p0, p1 = props_ref[0], props_ref[1]                  # (B, E) prop embeddings

    # cosine(results0, results1), per-norm clamp like torch.
    dot_e = jnp.sum(r0 * r1, axis=-1, keepdims=True)
    n0 = jnp.maximum(jnp.sqrt(jnp.sum(r0 * r0, axis=-1, keepdims=True)), _EPS)
    n1 = jnp.maximum(jnp.sqrt(jnp.sum(r1 * r1, axis=-1, keepdims=True)), _EPS)
    sim_e = dot_e * pl.reciprocal(n0 * n1, approx=True)

    # cosine(concat(dom0, rng0, prop0), concat(dom1, rng1, prop1)) without concat:
    # accumulate the dot / squared-norm contributions per piece.
    dot_p = (jnp.sum(d0 * d1, axis=-1, keepdims=True)
             + jnp.sum(g0 * g1, axis=-1, keepdims=True)
             + jnp.sum(p0 * p1, axis=-1, keepdims=True))
    sq0 = (jnp.sum(d0 * d0, axis=-1, keepdims=True)
           + jnp.sum(g0 * g0, axis=-1, keepdims=True)
           + jnp.sum(p0 * p0, axis=-1, keepdims=True))
    sq1 = (jnp.sum(d1 * d1, axis=-1, keepdims=True)
           + jnp.sum(g1 * g1, axis=-1, keepdims=True)
           + jnp.sum(p1 * p1, axis=-1, keepdims=True))
    m0 = jnp.maximum(jnp.sqrt(sq0), _EPS)
    m1 = jnp.maximum(jnp.sqrt(sq1), _EPS)
    sim_p = dot_p * pl.reciprocal(m0 * m1, approx=True)

    o_ref[:, 0:1] = sim_e
    o_ref[:, 1:2] = sim_p


def siamese_forward(params, inputs, inputs_prop):
    """inputs: (B, 2, S) int32; inputs_prop: (B, 2, 3, S) int32 -> (2B,) float32."""
    emb, v, w, b = params["emb"], params["v"], params["w"], params["b"]
    B, _, S = inputs.shape
    E = emb.shape[1]

    # Embedding gathers (glue; the frozen nn.Embedding lookup). Only the rows
    # that forward() actually consumes: prop slots 1 & 2 fully, slot 0 token 0.
    x_ent = jnp.take(emb, inputs, axis=0)                      # (B, 2, S, E)
    x_dr = jnp.take(emb, inputs_prop[:, :, 1:3, :], axis=0)    # (B, 2, 2, S, E)
    props = jnp.take(emb, inputs_prop[:, :, 0, 0], axis=0)     # (B, 2, E)

    # Six branches packed densely along one fused (6*B) row axis.
    branches = jnp.concatenate(
        [x_ent[:, 0], x_ent[:, 1],          # entity results, sides 0/1
         x_dr[:, 0, 0], x_dr[:, 1, 0],      # domains (slot 1)
         x_dr[:, 0, 1], x_dr[:, 1, 1]],     # ranges  (slot 2)
        axis=0,
    ).astype(jnp.float32)                                      # (6B, S, E)
    props_t = jnp.transpose(props, (1, 0, 2)).astype(jnp.float32)  # (2, B, E)

    v2 = v.reshape(1, S - 1).astype(jnp.float32)
    w_pad = jnp.zeros((2 * E, OUT_PAD), jnp.float32).at[:, :OUT_DIM].set(w)
    b_pad = jnp.zeros((1, OUT_PAD), jnp.float32).at[0, :OUT_DIM].set(b)

    # Single kernel invocation: all operands fit trivially in VMEM, no grid.
    sims = pl.pallas_call(
        _fused_kernel,
        out_shape=jax.ShapeDtypeStruct((B, 2), jnp.float32),
    )(branches, props_t, v2, w_pad, b_pad)

    return jnp.concatenate([sims[:, 0], sims[:, 1]])


def _reference_forward(params, inputs, inputs_prop):
    """Pure-JAX f32 reference (mirrors the PyTorch forward)."""
    emb, v, w, b = params["emb"], params["v"], params["w"], params["b"]

    def branch(x):  # x: (B, S, E)
        node = x[:, 0, :]
        nb = x[:, 1:, :]
        att = jnp.einsum("bse,be->bs", nb, node)
        mask = (att != 0.0).astype(jnp.float32)
        p = jax.nn.softmax(att + (mask - 1.0) * 9999.0, axis=-1)
        context = jnp.einsum("s,bse->be", v, p[:, :, None] * nb)
        return jnp.concatenate([node, context], axis=1) @ w + b

    def cos(a, c):
        na = jnp.maximum(jnp.linalg.norm(a, axis=1), _EPS)
        nc = jnp.maximum(jnp.linalg.norm(c, axis=1), _EPS)
        return jnp.sum(a * c, axis=1) / (na * nc)

    x_ent = jnp.take(emb, inputs, axis=0)
    x_prop = jnp.take(emb, inputs_prop, axis=0)
    r0, r1 = branch(x_ent[:, 0]), branch(x_ent[:, 1])
    d0, d1 = branch(x_prop[:, 0, 1]), branch(x_prop[:, 1, 1])
    g0, g1 = branch(x_prop[:, 0, 2]), branch(x_prop[:, 1, 2])
    p0, p1 = x_prop[:, 0, 0, 0, :], x_prop[:, 1, 0, 0, :]
    sim_e = cos(r0, r1)
    sim_p = cos(jnp.concatenate([d0, g0, p0], axis=1),
                jnp.concatenate([d1, g1, p1], axis=1))
    return jnp.concatenate([sim_e, sim_p])


if __name__ == "__main__":
    key = jax.random.PRNGKey(0)
    B, S, E, V = 2, 8, 32, 50   # batch, seq (node + 7 neighbours), emb dim, vocab
    n = S                        # stands in for int(sys.argv[1]); self.v has n-1 entries

    k_emb, k_w, k_b, k_i1, k_i2 = jax.random.split(key, 5)

    # Deterministic synthetic parameters (emb_vals, self.v, self.output)
    emb = jax.random.normal(k_emb, (V, E), jnp.float32)
    v = jnp.full((n - 1,), 1.0 / (n - 1), jnp.float32)
    w = jax.random.normal(k_w, (2 * E, OUT_DIM), jnp.float32) / jnp.sqrt(2.0 * E)
    bias = jax.random.normal(k_b, (OUT_DIM,), jnp.float32) * 0.01
    params = {"emb": emb, "v": v, "w": w, "b": bias}

    inputs = jax.random.randint(k_i1, (B, 2, S), 0, V, dtype=jnp.int32)
    inputs_prop = jax.random.randint(k_i2, (B, 2, 3, S), 0, V, dtype=jnp.int32)

    fwd = jax.jit(functools.partial(siamese_forward, params))
    out = fwd(inputs, inputs_prop)
    jax.block_until_ready(out)

    ref = _reference_forward(params, inputs, inputs_prop)
    assert out.shape == (2 * B,), out.shape
    assert bool(jnp.all(jnp.isfinite(out)))
    assert bool(jnp.allclose(out, ref, atol=1e-2, rtol=1e-2)), (out, ref)
    print("KERNEL_OK")
</pallas_src>

<mosaic_0001>
module attributes {stable_mosaic.version = 11 : i64} {
  func.func @_fused_kernel(%arg0: memref<12x8x32xf32, #tpu.memory_space<vmem>>, %arg1: memref<2x2x32xf32, #tpu.memory_space<vmem>>, %arg2: memref<1x7xf32, #tpu.memory_space<vmem>>, %arg3: memref<64x384xf32, #tpu.memory_space<vmem>>, %arg4: memref<1x384xf32, #tpu.memory_space<vmem>>, %arg5: memref<2x2xf32, #tpu.memory_space<vmem>>) attributes {dimension_semantics = [], scalar_prefetch = 0 : i64, scratch_operands = 0 : i64, tpu.core_type = #tpu.core_type<tc>} {
    %c0 = arith.constant 0 : index
    %c0_0 = arith.constant 0 : index
    %c0_1 = arith.constant 0 : index
    %0 = vector.load %arg0[%c0, %c0_0, %c0_1] : memref<12x8x32xf32, #tpu.memory_space<vmem>>, vector<12x8x32xf32>
    %1 = vector.extract_strided_slice %0 {offsets = [0, 0, 0], sizes = [12, 1, 32], strides = [1, 1, 1]} : vector<12x8x32xf32> to vector<12x1x32xf32>
    %2 = vector.shape_cast %1 : vector<12x1x32xf32> to vector<12x32xf32>
    %3 = vector.extract_strided_slice %0 {offsets = [0, 1, 0], sizes = [12, 7, 32], strides = [1, 1, 1]} : vector<12x8x32xf32> to vector<12x7x32xf32>
    %4 = vector.shape_cast %2 : vector<12x32xf32> to vector<12x1x32xf32>
    %5 = vector.broadcast %4 : vector<12x1x32xf32> to vector<12x7x32xf32>
    %6 = arith.mulf %3, %5 : vector<12x7x32xf32>
    %cst = arith.constant dense<0.000000e+00> : vector<12x7xf32>
    %7 = vector.multi_reduction <add>, %6, %cst [2] : vector<12x7x32xf32> to vector<12x7xf32>
    %cst_2 = arith.constant 0.000000e+00 : f32
    %8 = vector.broadcast %cst_2 : f32 to vector<12x7xf32>
    %9 = arith.cmpf one, %7, %8 : vector<12x7xf32>
    %10 = arith.extui %9 : vector<12x7xi1> to vector<12x7xi32>
    %11 = arith.sitofp %10 : vector<12x7xi32> to vector<12x7xf32>
    %cst_3 = arith.constant 1.000000e+00 : f32
    %12 = vector.broadcast %cst_3 : f32 to vector<12x7xf32>
    %13 = arith.subf %11, %12 : vector<12x7xf32>
    %cst_4 = arith.constant 9.999000e+03 : f32
    %14 = vector.broadcast %cst_4 : f32 to vector<12x7xf32>
    %15 = arith.mulf %13, %14 : vector<12x7xf32>
    %16 = arith.addf %7, %15 : vector<12x7xf32>
    %cst_5 = arith.constant dense<0xFF800000> : vector<12xf32>
    %17 = vector.multi_reduction <maximumf>, %16, %cst_5 [1] : vector<12x7xf32> to vector<12xf32>
    %18 = vector.shape_cast %17 : vector<12xf32> to vector<12x1xf32>
    %19 = vector.broadcast %18 : vector<12x1xf32> to vector<12x7xf32>
    %20 = arith.subf %16, %19 : vector<12x7xf32>
    %21 = math.exp %20 : vector<12x7xf32>
    %cst_6 = arith.constant dense<0.000000e+00> : vector<12xf32>
    %22 = vector.multi_reduction <add>, %21, %cst_6 [1] : vector<12x7xf32> to vector<12xf32>
    %23 = vector.shape_cast %22 : vector<12xf32> to vector<12x1xf32>
    %24 = tpu.reciprocal %23 {approx = true} : vector<12x1xf32> -> vector<12x1xf32>
    %25 = vector.broadcast %24 : vector<12x1xf32> to vector<12x7xf32>
    %26 = arith.mulf %21, %25 : vector<12x7xf32>
    %c0_7 = arith.constant 0 : index
    %c0_8 = arith.constant 0 : index
    %27 = vector.load %arg2[%c0_7, %c0_8] : memref<1x7xf32, #tpu.memory_space<vmem>>, vector<1x7xf32>
    %28 = vector.broadcast %27 : vector<1x7xf32> to vector<12x7xf32>
    %29 = arith.mulf %26, %28 : vector<12x7xf32>
    %30 = vector.shape_cast %29 : vector<12x7xf32> to vector<12x7x1xf32>
    %31 = vector.broadcast %30 : vector<12x7x1xf32> to vector<12x7x32xf32>
    %32 = arith.mulf %31, %3 : vector<12x7x32xf32>
    %cst_9 = arith.constant dense<0.000000e+00> : vector<12x32xf32>
    %33 = vector.multi_reduction <add>, %32, %cst_9 [1] : vector<12x7x32xf32> to vector<12x32xf32>
    %c0_10 = arith.constant 0 : index
    %c0_11 = arith.constant 0 : index
    %34 = vector.load %arg3[%c0_10, %c0_11] : memref<64x384xf32, #tpu.memory_space<vmem>>, vector<64x384xf32>
    %35 = vector.extract_strided_slice %34 {offsets = [0, 0], sizes = [32, 384], strides = [1, 1]} : vector<64x384xf32> to vector<32x384xf32>
    %cst_12 = arith.constant dense<0.000000e+00> : vector<12x384xf32>
    %36 = tpu.matmul %2, %35, %cst_12 {dimension_numbers = #tpu.dot_dimension_numbers<[1], [0], [0], [1], [0, 0, 1, 1], [], []>} : vector<12x32xf32>, vector<32x384xf32>, vector<12x384xf32> -> vector<12x384xf32>
    %37 = vector.extract_strided_slice %34 {offsets = [32, 0], sizes = [32, 384], strides = [1, 1]} : vector<64x384xf32> to vector<32x384xf32>
    %cst_13 = arith.constant dense<0.000000e+00> : vector<12x384xf32>
    %38 = tpu.matmul %33, %37, %cst_13 {dimension_numbers = #tpu.dot_dimension_numbers<[1], [0], [0], [1], [0, 0, 1, 1], [], []>} : vector<12x32xf32>, vector<32x384xf32>, vector<12x384xf32> -> vector<12x384xf32>
    %39 = arith.addf %36, %38 : vector<12x384xf32>
    %c0_14 = arith.constant 0 : index
    %c0_15 = arith.constant 0 : index
    %40 = vector.load %arg4[%c0_14, %c0_15] : memref<1x384xf32, #tpu.memory_space<vmem>>, vector<1x384xf32>
    %41 = vector.broadcast %40 : vector<1x384xf32> to vector<12x384xf32>
    %42 = arith.addf %39, %41 : vector<12x384xf32>
    %43 = vector.extract_strided_slice %42 {offsets = [0, 0], sizes = [2, 384], strides = [1, 1]} : vector<12x384xf32> to vector<2x384xf32>
    %44 = vector.extract_strided_slice %42 {offsets = [2, 0], sizes = [2, 384], strides = [1, 1]} : vector<12x384xf32> to vector<2x384xf32>
    %45 = vector.extract_strided_slice %42 {offsets = [4, 0], sizes = [2, 384], strides = [1, 1]} : vector<12x384xf32> to vector<2x384xf32>
    %46 = vector.extract_strided_slice %42 {offsets = [6, 0], sizes = [2, 384], strides = [1, 1]} : vector<12x384xf32> to vector<2x384xf32>
    %47 = vector.extract_strided_slice %42 {offsets = [8, 0], sizes = [2, 384], strides = [1, 1]} : vector<12x384xf32> to vector<2x384xf32>
    %48 = vector.extract_strided_slice %42 {offsets = [10, 0], sizes = [2, 384], strides = [1, 1]} : vector<12x384xf32> to vector<2x384xf32>
    %c0_16 = arith.constant 0 : index
    %c0_17 = arith.constant 0 : index
    %c0_18 = arith.constant 0 : index
    %49 = vector.load %arg1[%c0_16, %c0_17, %c0_18] : memref<2x2x32xf32, #tpu.memory_space<vmem>>, vector<1x2x32xf32>
    %50 = vector.shape_cast %49 : vector<1x2x32xf32> to vector<2x32xf32>
    %c1 = arith.constant 1 : index
    %c0_19 = arith.constant 0 : index
    %c0_20 = arith.constant 0 : index
    %51 = vector.load %arg1[%c1, %c0_19, %c0_20] : memref<2x2x32xf32, #tpu.memory_space<vmem>>, vector<1x2x32xf32>
    %52 = vector.shape_cast %51 : vector<1x2x32xf32> to vector<2x32xf32>
    %53 = arith.mulf %43, %44 : vector<2x384xf32>
    %cst_21 = arith.constant dense<0.000000e+00> : vector<2xf32>
    %54 = vector.multi_reduction <add>, %53, %cst_21 [1] : vector<2x384xf32> to vector<2xf32>
    %55 = vector.shape_cast %54 : vector<2xf32> to vector<2x1xf32>
    %56 = arith.mulf %43, %43 : vector<2x384xf32>
    %cst_22 = arith.constant dense<0.000000e+00> : vector<2xf32>
    %57 = vector.multi_reduction <add>, %56, %cst_22 [1] : vector<2x384xf32> to vector<2xf32>
    %58 = vector.shape_cast %57 : vector<2xf32> to vector<2x1xf32>
    %59 = math.sqrt %58 : vector<2x1xf32>
    %cst_23 = arith.constant 9.99999993E-9 : f32
    %60 = vector.broadcast %cst_23 : f32 to vector<2x1xf32>
    %61 = arith.maximumf %59, %60 : vector<2x1xf32>
    %62 = arith.mulf %44, %44 : vector<2x384xf32>
    %cst_24 = arith.constant dense<0.000000e+00> : vector<2xf32>
    %63 = vector.multi_reduction <add>, %62, %cst_24 [1] : vector<2x384xf32> to vector<2xf32>
    %64 = vector.shape_cast %63 : vector<2xf32> to vector<2x1xf32>
    %65 = math.sqrt %64 : vector<2x1xf32>
    %cst_25 = arith.constant 9.99999993E-9 : f32
    %66 = vector.broadcast %cst_25 : f32 to vector<2x1xf32>
    %67 = arith.maximumf %65, %66 : vector<2x1xf32>
    %68 = arith.mulf %61, %67 : vector<2x1xf32>
    %69 = tpu.reciprocal %68 {approx = true} : vector<2x1xf32> -> vector<2x1xf32>
    %70 = arith.mulf %55, %69 : vector<2x1xf32>
    %71 = arith.mulf %45, %46 : vector<2x384xf32>
    %cst_26 = arith.constant dense<0.000000e+00> : vector<2xf32>
    %72 = vector.multi_reduction <add>, %71, %cst_26 [1] : vector<2x384xf32> to vector<2xf32>
    %73 = vector.shape_cast %72 : vector<2xf32> to vector<2x1xf32>
    %74 = arith.mulf %47, %48 : vector<2x384xf32>
    %cst_27 = arith.constant dense<0.000000e+00> : vector<2xf32>
    %75 = vector.multi_reduction <add>, %74, %cst_27 [1] : vector<2x384xf32> to vector<2xf32>
    %76 = vector.shape_cast %75 : vector<2xf32> to vector<2x1xf32>
    %77 = arith.addf %73, %76 : vector<2x1xf32>
    %78 = arith.mulf %50, %52 : vector<2x32xf32>
    %cst_28 = arith.constant dense<0.000000e+00> : vector<2xf32>
    %79 = vector.multi_reduction <add>, %78, %cst_28 [1] : vector<2x32xf32> to vector<2xf32>
    %80 = vector.shape_cast %79 : vector<2xf32> to vector<2x1xf32>
    %81 = arith.addf %77, %80 : vector<2x1xf32>
    %82 = arith.mulf %45, %45 : vector<2x384xf32>
    %cst_29 = arith.constant dense<0.000000e+00> : vector<2xf32>
    %83 = vector.multi_reduction <add>, %82, %cst_29 [1] : vector<2x384xf32> to vector<2xf32>
    %84 = vector.shape_cast %83 : vector<2xf32> to vector<2x1xf32>
    %85 = arith.mulf %47, %47 : vector<2x384xf32>
    %cst_30 = arith.constant dense<0.000000e+00> : vector<2xf32>
    %86 = vector.multi_reduction <add>, %85, %cst_30 [1] : vector<2x384xf32> to vector<2xf32>
    %87 = vector.shape_cast %86 : vector<2xf32> to vector<2x1xf32>
    %88 = arith.addf %84, %87 : vector<2x1xf32>
    %89 = arith.mulf %50, %50 : vector<2x32xf32>
    %cst_31 = arith.constant dense<0.000000e+00> : vector<2xf32>
    %90 = vector.multi_reduction <add>, %89, %cst_31 [1] : vector<2x32xf32> to vector<2xf32>
    %91 = vector.shape_cast %90 : vector<2xf32> to vector<2x1xf32>
    %92 = arith.addf %88, %91 : vector<2x1xf32>
    %93 = arith.mulf %46, %46 : vector<2x384xf32>
    %cst_32 = arith.constant dense<0.000000e+00> : vector<2xf32>
    %94 = vector.multi_reduction <add>, %93, %cst_32 [1] : vector<2x384xf32> to vector<2xf32>
    %95 = vector.shape_cast %94 : vector<2xf32> to vector<2x1xf32>
    %96 = arith.mulf %48, %48 : vector<2x384xf32>
    %cst_33 = arith.constant dense<0.000000e+00> : vector<2xf32>
    %97 = vector.multi_reduction <add>, %96, %cst_33 [1] : vector<2x384xf32> to vector<2xf32>
    %98 = vector.shape_cast %97 : vector<2xf32> to vector<2x1xf32>
    %99 = arith.addf %95, %98 : vector<2x1xf32>
    %100 = arith.mulf %52, %52 : vector<2x32xf32>
    %cst_34 = arith.constant dense<0.000000e+00> : vector<2xf32>
    %101 = vector.multi_reduction <add>, %100, %cst_34 [1] : vector<2x32xf32> to vector<2xf32>
    %102 = vector.shape_cast %101 : vector<2xf32> to vector<2x1xf32>
    %103 = arith.addf %99, %102 : vector<2x1xf32>
    %104 = math.sqrt %92 : vector<2x1xf32>
    %cst_35 = arith.constant 9.99999993E-9 : f32
    %105 = vector.broadcast %cst_35 : f32 to vector<2x1xf32>
    %106 = arith.maximumf %104, %105 : vector<2x1xf32>
    %107 = math.sqrt %103 : vector<2x1xf32>
    %cst_36 = arith.constant 9.99999993E-9 : f32
    %108 = vector.broadcast %cst_36 : f32 to vector<2x1xf32>
    %109 = arith.maximumf %107, %108 : vector<2x1xf32>
    %110 = arith.mulf %106, %109 : vector<2x1xf32>
    %111 = tpu.reciprocal %110 {approx = true} : vector<2x1xf32> -> vector<2x1xf32>
    %112 = arith.mulf %81, %111 : vector<2x1xf32>
    %c0_37 = arith.constant 0 : index
    %c0_38 = arith.constant 0 : index
    %113 = vector.load %arg5[%c0_37, %c0_38] : memref<2x2xf32, #tpu.memory_space<vmem>>, vector<2x1xf32>
    tpu.vector_store %arg5[%c0_37, %c0_38], %70 {strides = array<i32>} : memref<2x2xf32, #tpu.memory_space<vmem>>, vector<2x1xf32>,
    %c0_39 = arith.constant 0 : index
    %c1_40 = arith.constant 1 : index
    %114 = vector.load %arg5[%c0_39, %c1_40] : memref<2x2xf32, #tpu.memory_space<vmem>>, vector<2x1xf32>
    tpu.vector_store %arg5[%c0_39, %c1_40], %112 {strides = array<i32>} : memref<2x2xf32, #tpu.memory_space<vmem>>, vector<2x1xf32>,
    return
  }
}

</mosaic_0001>

<bundles_post_ra>
// kernel: siamese_forward.1
= control target key start
LH: loop header
LB: loop body
LE: loop exit
PB: predicated region body
PF: predicated region fallthrough
CT: control target
= control target key end

     0   :  { %v32_v0 = vlaneseq  ;;  %v1557_v3 = vmov 0.0   ;;  %vm92_vm0 = vcmask 261121   ;;  %vm263_vm5 = vcmask 1041409   ;;  %s2088_s0 = inlined_call_operand.vmem [shape: f32[12,8,32], index: 0, kind: input, shape index: {}]   ;;  %s2089_s2 = inlined_call_operand.vmem [shape: f32[1,7], index: 2, kind: input, shape index: {}]   ;;  %s2090_s3 = inlined_call_operand.vmem [shape: f32[64,384], index: 3, kind: input, shape index: {}]   ;;  %s2091_s1 = inlined_call_operand.vmem [shape: f32[2,2,32], index: 1, kind: input, shape index: {}]   ;;  %s2092_s4 = inlined_call_operand.vmem [shape: f32[1,384], index: 4, kind: input, shape index: {}]   ;;  %s2093_s5 = inlined_call_operand.vmem [shape: f32[2,2], index: 5, kind: output, shape index: {}]  }
   0x1   :  { %v1593_v1 = vld [vmem:[%s2088_s0 + $0x10] sm:$0xff]  ;;  %912 = vmatprep.mubr.f32.mxu0 %v1557_v3  ;;  %v1602_v4 = vld [vmem:[%s2088_s0] sm:$0xff]  ;;  %v1607_v5 = vld [vmem:[%s2088_s0 + $0x18] sm:$0xff]  ;;  %vm265_vm8 = vcmask 1042434   ;;  %vm267_vm11 = vcmask 1043459   ;;  %vm269_vm12 = vcmask 1044484  }
   0x2   :  { %v1596_v2 = vshrl.u32 %v32_v0, 7  ;;  %v1612_v6 = vld [vmem:[%s2088_s0 + $0x8] sm:$0xff]  ;;  %v1625_v9 = vld [vmem:[%s2088_s0 + $0x20] sm:$0xff]  ;;  %v1646_v20 = vld [vmem:[%s2088_s0 + $0x38] sm:$0xff]  ;;  %v1708_v58 = vand.u32 127, %v32_v0  ;;  %vm271_vm15 = vcmask 1045509  }
   0x3   :  { %v1620_v8 = vld [vmem:[%s2088_s0 + $0x28] sm:$0xff]  ;;  %v1651_v21 = vld [vmem:[%s2088_s0 + $0x30] sm:$0xff]  ;;  %v1666_v30 = vld [vmem:[%s2088_s0 + $0x40] sm:$0xff] }
   0x4   :  { %v1615_v7 = vsub.s32 0, %v1596_v2  ;;  %v1671_v31 = vld [vmem:[%s2088_s0 + $0x48] sm:$0xff]  ;;  %v1684_v38 = vld [vmem:[%s2088_s0 + $0x50] sm:$0xff]  ;;  %v1689_v39 = vld [vmem:[%s2088_s0 + $0x58] sm:$0xff] }
   0x6   :  { %v43_v10 = vrot.slane %v1593_v1, %v1615_v7  ;;  %v35_v11 = vrot.slane %v1602_v4, %v1615_v7  ;;  %v47_v12 = vrot.slane %v1607_v5, %v1615_v7  ;;  %v39_v13 = vrot.slane %v1612_v6, %v1615_v7 }
   0x7   :  { %v55_v14 = vrot.slane %v1620_v8, %v1615_v7  ;;  %v51_v15 = vrot.slane %v1625_v9, %v1615_v7  ;;  %v63_v25 = vrot.slane %v1646_v20, %v1615_v7  ;;  %v59_v29 = vrot.slane %v1651_v21, %v1615_v7 }
   0x8   :  { %v82_v16 = vmul.f32 %v43_v10, %v1593_v1  ;;  %v80_v17 = vmul.f32 %v35_v11, %v1602_v4  ;;  %v83_v18 = vmul.f32 %v47_v12, %v1607_v5  ;;  %v81_v19 = vmul.f32 %v39_v13, %v1612_v6 }
   0x9   :  { %v85_v24 = vmul.f32 %v55_v14, %v1620_v8  ;;  %v84_v28 = vmul.f32 %v51_v15, %v1625_v9  ;;  %v87_v33 = vmul.f32 %v63_v25, %v1646_v20  ;;  %v86_v35 = vmul.f32 %v59_v29, %v1651_v21 }
   0xa   :  { %v99_v22 = vsel %vm92_vm0, %v82_v16, 0.0  ;;  %v93_v23 = vsel %vm92_vm0, %v80_v17, 0.0  ;;  %v102_v26 = vsel %vm92_vm0, %v83_v18, 0.0  ;;  %v96_v27 = vsel %vm92_vm0, %v81_v19, 0.0 }
   0xb   :  { %100 = vadd.xlane.f32.xlu1 %v99_v22  ;;  %94 = vadd.xlane.f32.xlu0 %v93_v23  ;;  %v108_v32 = vsel %vm92_vm0, %v85_v24, 0.0  ;;  %v105_v34 = vsel %vm92_vm0, %v84_v28, 0.0  ;;  %v67_v36 = vrot.slane %v1666_v30, %v1615_v7  ;;  %v71_v37 = vrot.slane %v1671_v31, %v1615_v7 }
   0xc   :  { %v114_v40 = vsel %vm92_vm0, %v87_v33, 0.0  ;;  %v75_v41 = vrot.slane %v1684_v38, %v1615_v7  ;;  %v111_v42 = vsel %vm92_vm0, %v86_v35, 0.0  ;;  %v79_v45 = vrot.slane %v1689_v39, %v1615_v7 }
   0xd   :  { %v88_v43 = vmul.f32 %v67_v36, %v1666_v30  ;;  %v89_v44 = vmul.f32 %v71_v37, %v1671_v31  ;;  %v1714_v13 = vsub.s32 %v1708_v58, %v1596_v2 }
   0xe   :  { %v90_v48 = vmul.f32 %v75_v41, %v1684_v38  ;;  %v91_v49 = vmul.f32 %v79_v45, %v1689_v39 }
   0xf   :  { %103 = vadd.xlane.f32.xlu1 %v102_v26  ;;  %97 = vadd.xlane.f32.xlu0 %v96_v27  ;;  %v117_v46 = vsel %vm92_vm0, %v88_v43, 0.0  ;;  %v120_v47 = vsel %vm92_vm0, %v89_v44, 0.0 }
  0x10   :  { %v123_v50 = vsel %vm92_vm0, %v90_v48, 0.0  ;;  %v126_v51 = vsel %vm92_vm0, %v91_v49, 0.0  ;;  %vm273_vm0 = vcmask 1046534  }
  0x13   :  { %109 = vadd.xlane.f32.xlu1 %v108_v32  ;;  %106 = vadd.xlane.f32.xlu0 %v105_v34 }
  0x17   :  { %115 = vadd.xlane.f32.xlu1 %v114_v40  ;;  %112 = vadd.xlane.f32.xlu0 %v111_v42 }
  0x1b   :  { %118 = vadd.xlane.f32.xlu0 %v117_v46  ;;  %121 = vadd.xlane.f32.xlu1 %v120_v47 }
  0x1f   :  { %124 = vadd.xlane.f32.xlu0 %v123_v50  ;;  %127 = vadd.xlane.f32.xlu1 %v126_v51 }
  0x98   :  { %v101_v52 = vpop.xlane.xlu1 %100  ;;  %v95_v53 = vpop.xlane.xlu0 %94 }
  0x99   :  { %vm131_vm1 = vcmp.ne.f32.partialorder %v101_v52, 0.0  ;;  %vm129_vm2 = vcmp.ne.f32.partialorder %v95_v53, 0.0 }
  0x9a   :  { %v1406_v54 = vsel %vm131_vm1, 1.0, %v1557_v3  ;;  %v1404_v55 = vsel %vm129_vm2, 1.0, %v1557_v3  ;;  %vm275_vm1 = vcmask 1047559  }
  0x9b   :  { %v1418_v56 = vadd.f32 -1.0, %v1406_v54  ;;  %v1416_v57 = vadd.f32 -1.0, %v1404_v55 }
  0x9c   :  { %v104_v59 = vpop.xlane.xlu1 %103  ;;  %v98_v60 = vpop.xlane.xlu0 %97 }
  0x9d   :  { %v179_v61 = vmul.f32 9999.0, %v1418_v56  ;;  %v177_v62 = vmul.f32 9999.0, %v1416_v57  ;;  %vm132_vm3 = vcmp.ne.f32.partialorder %v104_v59, 0.0  ;;  %vm130_vm4 = vcmp.ne.f32.partialorder %v98_v60, 0.0 }
  0x9e   :  { %v1407_v63 = vsel %vm132_vm3, 1.0, %v1557_v3  ;;  %v1405_v10 = vsel %vm130_vm4, 1.0, %v1557_v3  ;;  %vm282_vm4 = vcmask 64520  }
  0x9f   :  { %v1419_v11 = vadd.f32 -1.0, %v1407_v63  ;;  %v1417_v12 = vadd.f32 -1.0, %v1405_v10  ;;  %v1716_v14 = vadd.f32 %v179_v61, %v101_v52  ;;  %v1718_v0 = vadd.f32 %v177_v62, %v95_v53 }
  0xa0   :  { %v110_v15 = vpop.xlane.xlu1 %109  ;;  %v107_v16 = vpop.xlane.xlu0 %106 }
  0xa1   :  { %v180_v17 = vmul.f32 9999.0, %v1419_v11  ;;  %v178_v18 = vmul.f32 9999.0, %v1417_v12  ;;  %vm134_vm6 = vcmp.ne.f32.partialorder %v110_v15, 0.0  ;;  %vm133_vm7 = vcmp.ne.f32.partialorder %v107_v16, 0.0 }
  0xa2   :  { %v1409_v22 = vsel %vm134_vm6, 1.0, %v1557_v3  ;;  %v1408_v23 = vsel %vm133_vm7, 1.0, %v1557_v3  ;;  %v226_v24 = vrot.slane %v1716_v14, %v1714_v13  ;;  %v218_v25 = vrot.slane %v1718_v0, %v1714_v13 }
  0xa3   :  { %v1720_v19 = vadd.f32 %v178_v18, %v98_v60  ;;  %v1421_v26 = vadd.f32 -1.0, %v1409_v22  ;;  %v1420_v27 = vadd.f32 -1.0, %v1408_v23  ;;  %v1728_v32 = vadd.f32 %v180_v17, %v104_v59 }
  0xa4   :  { %v116_v28 = vpop.xlane.xlu1 %115  ;;  %v113_v29 = vpop.xlane.xlu0 %112  ;;  %vm286_vm6 = vcmask 60424   ;;  %vm497_vm7 = vcmask 56320  }
  0xa5   :  { %v222_v33 = vrot.slane %v1720_v19, %v1714_v13  ;;  %vm136_vm9 = vcmp.ne.f32.partialorder %v116_v28, 0.0  ;;  %vm135_vm10 = vcmp.ne.f32.partialorder %v113_v29, 0.0  ;;  %v182_v34 = vmul.f32 9999.0, %v1421_v26 }
  0xa6   :  { %v181_v35 = vmul.f32 9999.0, %v1420_v27  ;;  %v1411_v36 = vsel %vm136_vm9, 1.0, %v1557_v3  ;;  %v1410_v37 = vsel %vm135_vm10, 1.0, %v1557_v3  ;;  %v230_v50 = vrot.slane %v1728_v32, %v1714_v13 }
  0xa7   :  { %v264_v40 = vsel %vm263_vm5, %v222_v33, %v218_v25  ;;  %v1423_v41 = vadd.f32 -1.0, %v1411_v36  ;;  %v1422_v42 = vadd.f32 -1.0, %v1410_v37  ;;  %v1736_v44 = vadd.f32 %v182_v34, %v110_v15 }
  0xa8   :  { %v266_v43 = vsel %vm265_vm8, %v226_v24, %v264_v40  ;;  %v1738_v45 = vadd.f32 %v181_v35, %v107_v16  ;;  %v119_v46 = vpop.xlane.xlu0 %118  ;;  %v122_v47 = vpop.xlane.xlu1 %121  ;;  %vm501_vm9 = vcmask 52224   ;;  %vm712_vm10 = vcmask 260096  }
  0xa9   :  { %v184_v48 = vmul.f32 9999.0, %v1423_v41  ;;  %v183_v49 = vmul.f32 9999.0, %v1422_v42  ;;  %vm137_vm13 = vcmp.ne.f32.partialorder %v119_v46, 0.0  ;;  %vm138_vm14 = vcmp.ne.f32.partialorder %v122_v47, 0.0 }
  0xaa   :  { %v234_v51 = vrot.slane %v1738_v45, %v1714_v13  ;;  %v1412_v52 = vsel %vm137_vm13, 1.0, %v1557_v3  ;;  %v1413_v53 = vsel %vm138_vm14, 1.0, %v1557_v3  ;;  %v238_v59 = vrot.slane %v1736_v44, %v1714_v13 }
  0xab   :  { %v1746_v54 = vadd.f32 %v184_v48, %v116_v28  ;;  %v1748_v55 = vadd.f32 %v183_v49, %v113_v29  ;;  %v1424_v56 = vadd.f32 -1.0, %v1412_v52  ;;  %v1425_v57 = vadd.f32 -1.0, %v1413_v53 }
  0xac   :  { %v125_v60 = vpop.xlane.xlu0 %124  ;;  %v128_v61 = vpop.xlane.xlu1 %127  ;;  %v268_v62 = vsel %vm267_vm11, %v230_v50, %v266_v43  ;;  %v1558_v48 = vmov 0   ;;  %v1777_v49 = vsub.s32 1, %v1596_v2  ;;  %vm1252_vm13 = vcmask 1043458  }
  0xad   :  { %v242_v63 = vrot.slane %v1748_v55, %v1714_v13  ;;  %v185_v10 = vmul.f32 9999.0, %v1424_v56  ;;  %v186_v11 = vmul.f32 9999.0, %v1425_v57  ;;  %v246_v12 = vrot.slane %v1746_v54, %v1714_v13  ;;  %1514 = vset.pattern.permute.xlu1 %v1558_v48  ;;  %1513 = vset.pattern.permute.xlu0 %v1558_v48 }
  0xae   :  { %vm139_vm2 = vcmp.ne.f32.partialorder %v125_v60, 0.0  ;;  %vm140_vm3 = vcmp.ne.f32.partialorder %v128_v61, 0.0  ;;  %v270_v15 = vsel %vm269_vm12, %v234_v51, %v268_v62  ;;  %v1780_v51 = vsub.s32 2, %v1596_v2 }
  0xaf   :  { %v1758_v16 = vadd.f32 %v185_v10, %v119_v46  ;;  %v198_v17 = vadd.f32 %v186_v11, %v122_v47  ;;  %v1414_v18 = vsel %vm139_vm2, 1.0, %v1557_v3  ;;  %v1415_v22 = vsel %vm140_vm3, 1.0, %v1557_v3 }
  0xb0   :  { %v1426_v23 = vadd.f32 -1.0, %v1414_v18  ;;  %v1427_v24 = vadd.f32 -1.0, %v1415_v22  ;;  %v272_v25 = vsel %vm271_vm15, %v238_v59, %v270_v15  ;;  %v1786_v56 = vsub.s32 3, %v1596_v2 }
  0xb1   :  { %v250_v26 = vrot.slane %v1758_v16, %v1714_v13  ;;  %v254_v27 = vrot.slane %v198_v17, %v1714_v13  ;;  %v274_v28 = vsel %vm273_vm0, %v242_v63, %v272_v25  ;;  %v314_v18 = vsub.s32 5, %v1596_v2 }
  0xb2   :  { %v187_v29 = vmul.f32 9999.0, %v1426_v23  ;;  %v188_v33 = vmul.f32 9999.0, %v1427_v24  ;;  %v276_v34 = vsel %vm275_vm1, %v246_v12, %v274_v28  ;;  %vm1274_vm14 = vcmask 1045508  }
  0xb3   :  { %v283_v35 = vsel %vm282_vm4, %v276_v34, -inf  ;;  %v277_v40 = vsel %vm263_vm5, %v254_v27, %v250_v26  ;;  %v318_v26 = vsub.s32 6, %v1596_v2 }
  0xb4   :  { %v1768_v36 = vadd.f32 %v187_v29, %v125_v60  ;;  %v200_v37 = vadd.f32 %v188_v33, %v128_v61  ;;  %284 = vmax.xlane.f32.xlu0 %v283_v35  ;;  %v310_v61 = vsub.s32 4, %v1596_v2 }
  0xb6   :  { %v258_v41 = vrot.slane %v1768_v36, %v1714_v13  ;;  %v262_v42 = vrot.slane %v200_v37, %v1714_v13 }
  0xb8   :  { %v278_v43 = vsel %vm265_vm8, %v258_v41, %v277_v40 }
  0xb9   :  { %v279_v46 = vsel %vm267_vm11, %v262_v42, %v278_v43 }
  0xba   :  { %v287_v47 = vsel %vm286_vm6, %v279_v46, -inf }
  0xbb   :  { %288 = vmax.xlane.f32.xlu1 %v287_v47 }
 0x141   :  { %v285_v50 = vpop.xlane.xlu0 %284 }
 0x142   :  { %v295_v52 = vrot.slane %v285_v50, %v1615_v7  ;;  %v299_v13 = vrot.slane %v285_v50, %v1777_v49  ;;  %v303_v59 = vrot.slane %v285_v50, %v1780_v51  ;;  %v307_v63 = vrot.slane %v285_v50, %v1786_v56 }
 0x143   :  { %v319_v33 = vrot.slane %v285_v50, %v318_v26 }
 0x144   :  { %v352_v53 = vsub.f32 %v1718_v0, %v295_v52  ;;  %v353_v57 = vsub.f32 %v1720_v19, %v299_v13  ;;  %v354_v12 = vsub.f32 %v1716_v14, %v303_v59  ;;  %v311_v19 = vrot.slane %v285_v50, %v310_v61 }
 0x145   :  { %v355_v23 = vsub.f32 %v1728_v32, %v307_v63  ;;  %v315_v14 = vrot.slane %v285_v50, %v314_v18  ;;  %v322_v32 = vsub.s32 7, %v1596_v2  ;;  %v358_v40 = vsub.f32 %v1748_v55, %v319_v33 }
 0x146   :  { %v364_v60 = vmul.f32 1.442695, %v352_v53  ;;  %v366_v11 = vmul.f32 1.442695, %v353_v57  ;;  %v368_v25 = vmul.f32 1.442695, %v354_v12 }
 0x147   :  { %v370_v28 = vmul.f32 1.442695, %v355_v23  ;;  %v357_v34 = vsub.f32 %v1736_v44, %v315_v14  ;;  %v376_v46 = vmul.f32 1.442695, %v358_v40 }
 0x148   :  { %1515 = vpow2.f32 %v364_v60  ;;  %v289_v62 = vpop.xlane.xlu1 %288 }
 0x149   :  { %v331_v10 = vrot.slane %v289_v62, %v1777_v49  ;;  %v339_v0 = vrot.slane %v289_v62, %v1786_v56  ;;  %1517 = vpow2.f32 %v366_v11  ;;  %v374_v41 = vmul.f32 1.442695, %v357_v34 }
 0x14a   :  { %v327_v47 = vrot.slane %v289_v62, %v1615_v7  ;;  %v335_v52 = vrot.slane %v289_v62, %v1780_v51 }
 0x14b   :  { %v361_v15 = vsub.f32 %v198_v17, %v331_v10  ;;  %v363_v22 = vsub.f32 %v200_v37, %v339_v0  ;;  %v356_v17 = vsub.f32 %v1738_v45, %v311_v19  ;;  %v323_v45 = vrot.slane %v285_v50, %v322_v32 }
 0x14c   :  { %v360_v13 = vsub.f32 %v1758_v16, %v327_v47  ;;  %v436_v0 = vadd.s32 1, %v1708_v58 }
 0x14d   :  { %v382_v24 = vmul.f32 1.442695, %v361_v15  ;;  %v386_v27 = vmul.f32 1.442695, %v363_v22  ;;  %v372_v35 = vmul.f32 1.442695, %v356_v17  ;;  %v359_v44 = vsub.f32 %v1746_v54, %v323_v45 }
 0x14e   :  { %v362_v54 = vsub.f32 %v1768_v36, %v335_v52  ;;  %v380_v57 = vmul.f32 1.442695, %v360_v13  ;;  %v439_v19 = vsub.s32 %v436_v0, %v1596_v2 }
 0x14f   :  { %1519 = vpow2.f32 %v382_v24  ;;  %v378_v55 = vmul.f32 1.442695, %v359_v44 }
 0x150   :  { %1521 = vpow2.f32 %v368_v25  ;;  %v384_v60 = vmul.f32 1.442695, %v362_v54 }
 0x151   :  { %1523 = vpow2.f32 %v386_v27 }
 0x152   :  { %v1803_v29 = vpop.eup %1515  ;;  %1525 = vpow2.f32 %v370_v28 }
 0x153   :  { %401 = vperm.xlu0 %1513, %v1803_v29   ;;  %v1810_v37 = vpop.eup %1517  ;;  %1527 = vpow2.f32 %v372_v35 }
 0x154   :  { %404 = vperm.xlu1 %1514, %v1810_v37   ;;  %1529 = vpow2.f32 %v374_v41 }
 0x155   :  { %1531 = vpow2.f32 %v376_v46 }
 0x156   :  { %1533 = vpow2.f32 %v378_v55 }
 0x157   :  { %1535 = vpow2.f32 %v380_v57 }
 0x158   :  { %1537 = vpow2.f32 %v384_v60 }
 0x159   :  { %v1816_v42 = vpop.eup %1519 }
 0x15a   :  { %v1818_v43 = vpop.eup %1521  ;;  %428 = vperm.xlu0 %1513, %v1816_v42  }
 0x15b   :  { %407 = vperm.xlu1 %1514, %v1818_v43   ;;  %v1824_v48 = vpop.eup %1523 }
 0x15c   :  { %v1826_v50 = vpop.eup %1525 }
 0x15d   :  { %v1832_v53 = vpop.eup %1527 }
 0x15e   :  { %434 = vperm.xlu0 %1513, %v1824_v48   ;;  %v1836_v59 = vpop.eup %1529 }
 0x15f   :  { %410 = vperm.xlu1 %1514, %v1826_v50   ;;  %v1839_v63 = vpop.eup %1531 }
 0x160   :  { %v1842_v16 = vpop.eup %1533 }
 0x161   :  { %v1536_v62 = vpop.eup %1535 }
 0x162   :  { %v1845_v10 = vpop.eup %1537 }
 0x163   :  { %413 = vperm.xlu1 %1514, %v1832_v53  }
 0x167   :  { %416 = vperm.xlu1 %1514, %v1836_v59  }
 0x16b   :  { %419 = vperm.xlu1 %1514, %v1839_v63  }
 0x16f   :  { %422 = vperm.xlu1 %1514, %v1842_v16  }
 0x173   :  { %425 = vperm.xlu1 %1514, %v1536_v62  }
 0x177   :  { %431 = vperm.xlu1 %1514, %v1845_v10  }
 0x1d2   :  { %v402_v22 = vpop.permute.xlu0 %401 }
 0x1d3   :  { %v405_v36 = vpop.permute.xlu1 %404  ;;  %v440_v25 = vrot.slane %v402_v22, %v439_v19 }
 0x1d4   :  { %v444_v24 = vrot.slane %v405_v36, %v439_v19 }
 0x1d6   :  { %v485_v33 = vsel %vm263_vm5, %v444_v24, %v440_v25  ;;  %v1428_v25 = vld [vmem:[%s2089_s2] ss:$0 sm:$0xff] }
 0x1d9   :  { %v429_v44 = vpop.permute.xlu0 %428 }
 0x1da   :  { %v408_v11 = vpop.permute.xlu1 %407  ;;  %v476_v36 = vrot.slane %v429_v44, %v439_v19 }
 0x1db   :  { %v448_v27 = vrot.slane %v408_v11, %v439_v19 }
 0x1dd   :  { %v486_v35 = vsel %vm265_vm8, %v448_v27, %v485_v33  ;;  %v435_v60 = vpop.permute.xlu0 %434 }
 0x1de   :  { %v411_v12 = vpop.permute.xlu1 %410  ;;  %v484_v0 = vrot.slane %v435_v60, %v439_v19 }
 0x1df   :  { %v452_v14 = vrot.slane %v411_v12, %v439_v19 }
 0x1e1   :  { %v487_v40 = vsel %vm267_vm11, %v452_v14, %v486_v35 }
 0x1e2   :  { %v414_v15 = vpop.permute.xlu1 %413 }
 0x1e3   :  { %v456_v17 = vrot.slane %v414_v15, %v439_v19 }
 0x1e5   :  { %v488_v58 = vsel %vm269_vm12, %v456_v17, %v487_v40 }
 0x1e6   :  { %v417_v23 = vpop.permute.xlu1 %416 }
 0x1e7   :  { %v460_v34 = vrot.slane %v417_v23, %v439_v19 }
 0x1e9   :  { %v489_v46 = vsel %vm271_vm15, %v460_v34, %v488_v58 }
 0x1ea   :  { %v420_v28 = vpop.permute.xlu1 %419 }
 0x1eb   :  { %v464_v45 = vrot.slane %v420_v28, %v439_v19 }
 0x1ed   :  { %v490_v55 = vsel %vm273_vm0, %v464_v45, %v489_v46 }
 0x1ee   :  { %v423_v41 = vpop.permute.xlu1 %422 }
 0x1ef   :  { %v468_v47 = vrot.slane %v423_v41, %v439_v19 }
 0x1f1   :  { %v491_v52 = vsel %vm275_vm1, %v468_v47, %v490_v55 }
 0x1f2   :  { %v426_v13 = vpop.permute.xlu1 %425  ;;  %v498_v54 = vsel %vm497_vm7, %v491_v52, 0.0 }
 0x1f3   :  { %499 = vadd.xlane.f32.xlu1 %v498_v54  ;;  %v472_v57 = vrot.slane %v426_v13, %v439_v19 }
 0x1f5   :  { %v492_v15 = vsel %vm263_vm5, %v476_v36, %v472_v57 }
 0x1f6   :  { %v432_v11 = vpop.permute.xlu1 %431 }
 0x1f7   :  { %v480_v12 = vrot.slane %v432_v11, %v439_v19 }
 0x1f9   :  { %v493_v22 = vsel %vm265_vm8, %v480_v12, %v492_v15 }
 0x1fa   :  { %v494_v23 = vsel %vm267_vm11, %v484_v0, %v493_v22 }
 0x1fb   :  { %v502_v24 = vsel %vm501_vm9, %v494_v23, 0.0  ;;  %vm1392_vm9 = vcmask 1024  }
 0x1fc   :  { %503 = vadd.xlane.f32.xlu0 %v502_v24 }
 0x212   :  { %589 = vbcast.lane.b32.xlu0 %v1428_v25, 511  ;;  %v811_v25 = vld [vmem:[%s2090_s3 + $0x70] sm:$0xff] }
 0x280   :  { %v500_v27 = vpop.xlane.xlu1 %499 }
 0x281   :  { %1539 = vrcp.f32 %v500_v27  ;;  %v814_v27 = vld [vmem:[%s2090_s3 + $0x88] sm:$0xff] }
 0x289   :  { %v504_v14 = vpop.xlane.xlu0 %503 }
 0x28a   :  { %1541 = vrcp.f32 %v504_v14  ;;  %v816_v14 = vld [vmem:[%s2090_s3 + $0x98] sm:$0xff] }
 0x28b   :  { %v1540_v17 = vpop.eup %1539 }
 0x28c   :  { %v520_v34 = vrot.slane %v1540_v17, %v1780_v51  ;;  %v512_v35 = vrot.slane %v1540_v17, %v1615_v7  ;;  %v528_v41 = vrot.slane %v1540_v17, %v310_v61  ;;  %v516_v44 = vrot.slane %v1540_v17, %v1777_v49 }
 0x28d   :  { %v590_v58 = vpop.permute.xlu0 %589  ;;  %v536_v13 = vrot.slane %v1540_v17, %v318_v26 }
 0x28e   :  { %v571_v55 = vmul.f32 %v1818_v43, %v520_v34  ;;  %v569_v52 = vmul.f32 %v1803_v29, %v512_v35  ;;  %v573_v57 = vmul.f32 %v1832_v53, %v528_v41  ;;  %v570_v61 = vmul.f32 %v1810_v37, %v516_v44  ;;  %v798_v41 = vld [vmem:[%s2090_s3 + $0x8] sm:$0xff]  ;;  %v801_v44 = vld [vmem:[%s2090_s3 + $0x20] sm:$0xff] }
 0x28f   :  { %v575_v60 = vmul.f32 %v1839_v63, %v536_v13  ;;  %v532_v29 = vrot.slane %v1540_v17, %v314_v18  ;;  %v540_v53 = vrot.slane %v1540_v17, %v322_v32 }
 0x290   :  { %v592_v54 = vmul.f32 %v590_v58, %v569_v52  ;;  %v596_v43 = vmul.f32 %v590_v58, %v573_v57  ;;  %v593_v36 = vmul.f32 %v590_v58, %v570_v61 }
 0x291   :  { %v598_v12 = vmul.f32 %v590_v58, %v575_v60  ;;  %v574_v63 = vmul.f32 %v1836_v59, %v532_v29  ;;  %v576_v22 = vmul.f32 %v1842_v16, %v540_v53  ;;  %v810_v59 = vld [vmem:[%s2090_s3 + $0x68] sm:$0xff] }
 0x293   :  { %v597_v15 = vmul.f32 %v590_v58, %v574_v63  ;;  %v599_v23 = vmul.f32 %v590_v58, %v576_v22 }
 0x294   :  { %v1542_v19 = vpop.eup %1541 }
 0x295   :  { %v548_v28 = vrot.slane %v1542_v19, %v1777_v49  ;;  %v544_v33 = vrot.slane %v1542_v19, %v1615_v7  ;;  %v552_v26 = vrot.slane %v1542_v19, %v1780_v51 }
 0x297   :  { %v578_v45 = vmul.f32 %v1816_v42, %v548_v28  ;;  %v577_v40 = vmul.f32 %v1536_v62, %v544_v33  ;;  %v524_v42 = vrot.slane %v1540_v17, %v1786_v56  ;;  %v594_v62 = vmul.f32 %v590_v58, %v571_v55  ;;  %v815_v28 = vld [vmem:[%s2090_s3 + $0x90] sm:$0xff]  ;;  %v818_v33 = vld [vmem:[%s2090_s3 + $0xa8] sm:$0xff] }
 0x298   :  { %v579_v0 = vmul.f32 %v1845_v10, %v552_v26  ;;  %v813_v10 = vld [vmem:[%s2090_s3 + $0x80] sm:$0xff]  ;;  %v1480_v17 = vpack.c.bf16 %v814_v27, %v811_v25  ;;  %v1478_v35 = vpack.c.bf16 %v818_v33, %v815_v28  ;;  %v802_v55 = vld [vmem:[%s2090_s3 + $0x28] sm:$0xff] }
 0x299   :  { %v601_v46 = vmul.f32 %v590_v58, %v578_v45  ;;  %v600_v47 = vmul.f32 %v590_v58, %v577_v40  ;;  %v572_v11 = vmul.f32 %v1826_v50, %v524_v42  ;;  %v556_v50 = vrot.slane %v1542_v19, %v1786_v56  ;;  %v809_v56 = vld [vmem:[%s2090_s3 + $0x60] sm:$0xff]  ;;  %v819_v19 = vld [vmem:[%s2090_s3 + $0xb0] sm:$0xff]  ;;  %v820_v40 = vld [vmem:[%s2090_s3 + $0xb8] sm:$0xff] }
 0x29a   :  { %v602_v18 = vmul.f32 %v590_v58, %v579_v0  ;;  %v1472_v24 = vpack.c.bf16 %v813_v10, %v810_v59  ;;  %v1476_v34 = vpack.c.bf16 %v819_v19, %v816_v14  ;;  %v817_v45 = vld [vmem:[%s2090_s3 + $0xa0] sm:$0xff]  ;;  %1481 = vmatprep.subr.bf16.mxu1 %v1480_v17 }
 0x29b   :  { %651 = vperm.xlu1 %1514, %v601_v46   ;;  %646 = vperm.xlu0 %1513, %v600_v47   ;;  %v595_v37 = vmul.f32 %v590_v58, %v572_v11  ;;  %v580_v2 = vmul.f32 %v1824_v48, %v556_v50  ;;  %v812_v48 = vld [vmem:[%s2090_s3 + $0x78] sm:$0xff]  ;;  %v1488_v46 = vpack.c.bf16 %v801_v44, %v798_v41  ;;  %v799_v47 = vld [vmem:[%s2090_s3 + $0x10] sm:$0xff] }
 0x29c   :  { %v1474_v16 = vpack.c.bf16 %v812_v48, %v809_v56  ;;  %1473 = vmatprep.subr.bf16.mxu0 %v1472_v24  ;;  %1483 = vmatpush3.bf16.msra.mxu1 %v1480_v17  ;;  %v1938_v52 = vpack.c.bf16 %v802_v55, %v799_v47 }
 0x29d   :  { %v603_v32 = vmul.f32 %v590_v58, %v580_v2  ;;  %v1484_v58 = vpack.c.bf16 %v820_v40, %v817_v45  ;;  %v1014_v45 = vrot.slane %v1593_v1, 6 }
 0x29e   :  { %1475 = vmatpush1.bf16.msra.mxu0 %v1474_v16 }
 0x29f   :  { %616 = vperm.xlu0 %1513, %v594_v62   ;;  %606 = vperm.xlu1 %1514, %v592_v54  }
 0x2a0   :  { %1477 = vmatprep.subr.bf16.mxu0 %v1476_v34  ;;  %1485 = vmatprep.subr.bf16.mxu1 %v1484_v58 }
 0x2a1   :  { %1487 = vmatpush3.bf16.msra.mxu1 %v1484_v58 }
 0x2a2   :  { %1479 = vmatpush1.bf16.msra.mxu0 %v1478_v35  ;;  %1497 = vmatprep.subr.bf16.mxu1 %v1938_v52 }
 0x2a3   :  { %626 = vperm.xlu0 %1513, %v596_v43   ;;  %611 = vperm.xlu1 %1514, %v593_v36  }
 0x2a4   :  { %1489 = vmatprep.subr.bf16.mxu0 %v1488_v46 }
 0x2a7   :  { %636 = vperm.xlu0 %1513, %v598_v12   ;;  %621 = vperm.xlu1 %1514, %v595_v37  }
 0x2ab   :  { %656 = vperm.xlu0 %1513, %v602_v18   ;;  %631 = vperm.xlu1 %1514, %v597_v15  }
 0x2af   :  { %641 = vperm.xlu1 %1514, %v599_v23   ;;  %v1012_v23 = vrot.slane %v1612_v6, 7 }
 0x2b1   :  { %v1013_v40 = vsel %vm263_vm5, %v1012_v23, %v1602_v4 }
 0x2b3   :  { %661 = vperm.xlu1 %1514, %v603_v32  }
 0x31a   :  { %v652_v13 = vpop.permute.xlu1 %651  ;;  %v647_v42 = vpop.permute.xlu0 %646 }
 0x31b   :  { %v673_v62 = vmul.f32 %v652_v13, %v1671_v31  ;;  %v672_v54 = vmul.f32 %v647_v42, %v1666_v30 }
 0x31d   :  { %v697_v57 = vrot.slane %v673_v62, 1  ;;  %v696_v61 = vrot.slane %v672_v54, 1  ;;  %v1016_v62 = vrot.slane %v1607_v5, 5 }
 0x31e   :  { %v617_v60 = vpop.permute.xlu0 %616  ;;  %v607_v29 = vpop.permute.xlu1 %606 }
 0x31f   :  { %v666_v43 = vmul.f32 %v617_v60, %v1593_v1  ;;  %v664_v36 = vmul.f32 %v607_v29, %v1602_v4  ;;  %v776_v53 = vsel %vm712_vm10, %v697_v57, 0.0  ;;  %v769_v12 = vsel %vm712_vm10, %v696_v61, 0.0 }
 0x320   :  { %v777_v59 = vrot.slane %v776_v53, 4  ;;  %v770_v10 = vrot.slane %v769_v12, 4 }
 0x321   :  { %v690_v11 = vrot.slane %v666_v43, 1  ;;  %v688_v26 = vrot.slane %v664_v36, 1  ;;  %v1015_v43 = vsel %vm265_vm8, %v1014_v45, %v1013_v40 }
 0x322   :  { %v627_v37 = vpop.permute.xlu0 %626  ;;  %v612_v0 = vpop.permute.xlu1 %611  ;;  %v778_v58 = vadd.f32 %v777_v59, %v776_v53  ;;  %v771_v41 = vadd.f32 %v770_v10, %v769_v12 }
 0x323   :  { %v727_v63 = vsel %vm712_vm10, %v690_v11, 0.0  ;;  %v713_v30 = vsel %vm712_vm10, %v688_v26, 0.0  ;;  %v668_v18 = vmul.f32 %v627_v37, %v1625_v9  ;;  %v665_v15 = vmul.f32 %v612_v0, %v1612_v6 }
 0x324   :  { %v728_v22 = vrot.slane %v727_v63, 4  ;;  %v714_v50 = vrot.slane %v713_v30, 4  ;;  %v779_v36 = vrot.slane %v778_v58, 2  ;;  %v772_v12 = vrot.slane %v771_v41, 2 }
 0x325   :  { %v692_v2 = vrot.slane %v668_v18, 1  ;;  %v689_v32 = vrot.slane %v665_v15, 1 }
 0x326   :  { %v729_v24 = vadd.f32 %v728_v22, %v727_v63  ;;  %v715_v56 = vadd.f32 %v714_v50, %v713_v30  ;;  %v637_v48 = vpop.permute.xlu0 %636  ;;  %v622_v16 = vpop.permute.xlu1 %621 }
 0x327   :  { %v741_v25 = vsel %vm712_vm10, %v692_v2, 0.0  ;;  %v720_v27 = vsel %vm712_vm10, %v689_v32, 0.0  ;;  %v670_v14 = vmul.f32 %v637_v48, %v1651_v21  ;;  %v667_v17 = vmul.f32 %v622_v16, %v1607_v5 }
 0x328   :  { %v730_v19 = vrot.slane %v729_v24, 2  ;;  %v716_v28 = vrot.slane %v715_v56, 2  ;;  %v742_v33 = vrot.slane %v741_v25, 4  ;;  %v721_v6 = vrot.slane %v720_v27, 4 }
 0x329   :  { %v694_v34 = vrot.slane %v670_v14, 1  ;;  %v691_v35 = vrot.slane %v667_v17, 1  ;;  %v780_v48 = vadd.f32 %v779_v36, %v778_v58 }
 0x32a   :  { %v657_v44 = vpop.permute.xlu0 %656  ;;  %v632_v46 = vpop.permute.xlu1 %631  ;;  %v743_v47 = vadd.f32 %v742_v33, %v741_v25  ;;  %v722_v55 = vadd.f32 %v721_v6, %v720_v27  ;;  %v731_v54 = vadd.f32 %v730_v19, %v729_v24  ;;  %v717_v60 = vadd.f32 %v716_v28, %v715_v56 }
 0x32b   :  { %v755_v13 = vsel %vm712_vm10, %v694_v34, 0.0  ;;  %v734_v42 = vsel %vm712_vm10, %v691_v35, 0.0  ;;  %v674_v29 = vmul.f32 %v657_v44, %v1684_v38  ;;  %v669_v4 = vmul.f32 %v632_v46, %v1620_v8 }
 0x32c   :  { %v756_v57 = vrot.slane %v755_v13, 4  ;;  %v735_v61 = vrot.slane %v734_v42, 4  ;;  %v723_v1 = vrot.slane %v722_v55, 2  ;;  %v744_v11 = vrot.slane %v743_v47, 2 }
 0x32d   :  { %v698_v0 = vrot.slane %v674_v29, 1  ;;  %v693_v63 = vrot.slane %v669_v4, 1  ;;  %v732_v5 = vrot.slane %v731_v54, 1  ;;  %v718_v22 = vrot.slane %v717_v60, 1 }
 0x32e   :  { %v736_v26 = vadd.f32 %v735_v61, %v734_v42  ;;  %v642_v53 = vpop.permute.xlu1 %641  ;;  %v724_v37 = vadd.f32 %v723_v1, %v722_v55  ;;  %v757_v30 = vadd.f32 %v756_v57, %v755_v13  ;;  %v745_v32 = vadd.f32 %v744_v11, %v743_v47 }
 0x32f   :  { %v671_v15 = vmul.f32 %v642_v53, %v1646_v20  ;;  %v783_v23 = vsel %vm712_vm10, %v698_v0, 0.0  ;;  %v748_v2 = vsel %vm712_vm10, %v693_v63, 0.0  ;;  %v773_v33 = vadd.f32 %v772_v12, %v771_v41 }
 0x330   :  { %v737_v18 = vrot.slane %v736_v26, 2  ;;  %v725_v50 = vrot.slane %v724_v37, 1  ;;  %v784_v10 = vrot.slane %v783_v23, 4  ;;  %v749_v24 = vrot.slane %v748_v2, 4 }
 0x331   :  { %v695_v25 = vrot.slane %v671_v15, 1  ;;  %v758_v14 = vrot.slane %v757_v30, 2  ;;  %v719_v6 = vadd.f32 %v718_v22, %v717_v60  ;;  %v733_v45 = vadd.f32 %v732_v5, %v731_v54 }
 0x332   :  { %v738_v59 = vadd.f32 %v737_v18, %v736_v26  ;;  %v662_v56 = vpop.permute.xlu1 %661  ;;  %v726_v16 = vadd.f32 %v725_v50, %v724_v37  ;;  %v785_v19 = vadd.f32 %v784_v10, %v783_v23  ;;  %v750_v28 = vadd.f32 %v749_v24, %v748_v2  ;;  %v800_v50 = vld [vmem:[%s2090_s3 + $0x18] sm:$0xff]  ;;  %v807_v24 = vld [vmem:[%s2090_s3 + $0x50] sm:$0xff] }
 0x333   :  { %v675_v27 = vmul.f32 %v662_v56, %v1689_v39  ;;  %v762_v34 = vsel %vm712_vm10, %v695_v25, 0.0  ;;  %v746_v40 = vrot.slane %v745_v32, 1  ;;  %v759_v39 = vadd.f32 %v758_v14, %v757_v30  ;;  %v804_v10 = vld [vmem:[%s2090_s3 + $0x38] sm:$0xff] }
 0x334   :  { %v739_v17 = vrot.slane %v738_v59, 1  ;;  %v786_v44 = vrot.slane %v785_v19, 2  ;;  %v751_v46 = vrot.slane %v750_v28, 2  ;;  %v833_v47 = vsel %vm263_vm5, %v726_v16, %v719_v6 }
 0x335   :  { %v699_v35 = vrot.slane %v675_v27, 1  ;;  %v763_v55 = vrot.slane %v762_v34, 4  ;;  %v1018_v41 = vrot.slane %v1625_v9, 4  ;;  %v781_v60 = vrot.slane %v780_v48, 1 }
 0x336   :  { %v740_v58 = vadd.f32 %v739_v17, %v738_v59  ;;  %v787_v42 = vadd.f32 %v786_v44, %v785_v19  ;;  %v752_v57 = vadd.f32 %v751_v46, %v750_v28  ;;  %v1017_v29 = vsel %vm267_vm11, %v1016_v62, %v1015_v43  ;;  %v805_v17 = vld [vmem:[%s2090_s3 + $0x40] sm:$0xff]  ;;  %v808_v19 = vld [vmem:[%s2090_s3 + $0x58] sm:$0xff] }
 0x337   :  { %v790_v13 = vsel %vm712_vm10, %v699_v35, 0.0  ;;  %v764_v1 = vadd.f32 %v763_v55, %v762_v34  ;;  %v774_v54 = vrot.slane %v773_v33, 1  ;;  %v834_v11 = vsel %vm265_vm8, %v733_v45, %v833_v47  ;;  %v806_v34 = vld [vmem:[%s2090_s3 + $0x48] sm:$0xff]  ;;  %v1555_v55 = vld [vmem:[%s2088_s0 + $0x40] sm:$0xff] }
 0x338   :  { %v791_v61 = vrot.slane %v790_v13, 4  ;;  %v753_v4 = vrot.slane %v752_v57, 1  ;;  %v1020_v26 = vrot.slane %v1620_v8, 3  ;;  %v788_v53 = vrot.slane %v787_v42, 1  ;;  %v797_v8 = vld [vmem:[%s2090_s3] sm:$0xff] }
 0x339   :  { %v765_v12 = vrot.slane %v764_v1, 2  ;;  %v835_v37 = vsel %vm267_vm11, %v740_v58, %v834_v11  ;;  %v747_v0 = vadd.f32 %v746_v40, %v745_v32  ;;  %v760_v63 = vrot.slane %v759_v39, 1 }
 0x33a   :  { %v792_v36 = vadd.f32 %v791_v61, %v790_v13  ;;  %v754_v5 = vadd.f32 %v753_v4, %v752_v57  ;;  %v1019_v18 = vsel %vm269_vm12, %v1018_v41, %v1017_v29  ;;  %v782_v15 = vadd.f32 %v781_v60, %v780_v48 }
 0x33b   :  { %v766_v9 = vadd.f32 %v765_v12, %v764_v1  ;;  %v775_v62 = vadd.f32 %v774_v54, %v773_v33  ;;  %v836_v22 = vsel %vm269_vm12, %v747_v0, %v835_v37  ;;  %v1022_v23 = vrot.slane %v1651_v21, 2  ;;  %v1211_v1 = vld [vmem:[%s2091_s1] sm:$0x3] }
 0x33c   :  { %v793_v30 = vrot.slane %v792_v36, 2  ;;  %v789_v2 = vadd.f32 %v788_v53, %v787_v42  ;;  %v837_v59 = vsel %vm271_vm15, %v754_v5, %v836_v22  ;;  %v1024_v56 = vrot.slane %v1646_v20, 1 }
 0x33d   :  { %v767_v32 = vrot.slane %v766_v9, 1  ;;  %v761_v48 = vadd.f32 %v760_v63, %v759_v39  ;;  %v1021_v25 = vsel %vm271_vm15, %v1020_v26, %v1019_v18  ;;  %v1026_v21 = vrot.slane %v1671_v31, 7  ;;  %v803_v31 = vld [vmem:[%s2090_s3 + $0x30] sm:$0xff] }
 0x33e   :  { %v794_v43 = vadd.f32 %v793_v30, %v792_v36  ;;  %vm843_vm12 = vcmask 261120   ;;  %v1490_v14 = vpack.c.bf16 %v800_v50, %v797_v8  ;;  %v840_v33 = vsel %vm263_vm5, %v782_v15, %v775_v62  ;;  %v1188_v36 = vld [vmem:[%s2092_s4] sm:$0x7] }
 0x33f   :  { %v768_v27 = vadd.f32 %v767_v32, %v766_v9  ;;  %v838_v28 = vsel %vm273_vm0, %v761_v48, %v837_v59  ;;  %v1492_v6 = vpack.c.bf16 %v807_v24, %v804_v10  ;;  %v841_v45 = vsel %vm265_vm8, %v789_v2, %v840_v33 }
 0x340   :  { %v795_v16 = vrot.slane %v794_v43, 1  ;;  %v1023_v40 = vsel %vm273_vm0, %v1022_v23, %v1021_v25  ;;  %v1500_v46 = vpack.c.bf16 %v808_v19, %v805_v17  ;;  %v1028_v47 = vrot.slane %v1684_v38, 6  ;;  %v1556_v38 = vld [vmem:[%s2088_s0 + $0x58] sm:$0xff] }
 0x341   :  { %v839_v35 = vsel %vm275_vm1, %v768_v27, %v838_v28  ;;  %v1494_v58 = vpack.c.bf16 %v806_v34, %v803_v31  ;;  %v1027_v13 = vsel %vm263_vm5, %v1026_v21, %v1555_v55  ;;  %v1025_v39 = vsel %vm275_vm1, %v1024_v56, %v1023_v40 }
 0x342   :  { %v796_v20 = vadd.f32 %v795_v16, %v794_v43  ;;  %1429 = vmatmul.mubr.msk.f32.vlgmr.msra.gmra.mrb[0].mxu0 %vm843_vm12, %v839_v35  ;;  %1458 = vmatprep.mubr.msk.f32.mxu1 %vm843_vm12, %v839_v35  ;;  %v1030_v42 = vrot.slane %v1556_v38, 5  ;;  %v1029_v57 = vsel %vm265_vm8, %v1028_v47, %v1027_v13  ;;  %vm1306_vm5 = vcmask 254976  }
 0x343   :  { %1491 = vmatpush1.bf16.msra.mxu0 %v1490_v14  ;;  %918 = vmatprep.mubr.f32.mxu0 %v1557_v3  ;;  %v1335_v29 = vmul.f32 %v1211_v1, %v1211_v1  ;;  %v1193_v11 = vrot.slane %v1188_v36, %v1615_v7  ;;  %v1197_v26 = vrot.slane %v1188_v36, %v1777_v49  ;;  %vm1343_vm8 = vcmask 1047558  }
 0x344   :  { %v842_v44 = vsel %vm267_vm11, %v796_v20, %v841_v45  ;;  %1493 = vmatprep.subr.bf16.mxu0 %v1492_v6  ;;  %v1031_v61 = vsel %vm267_vm11, %v1030_v42, %v1029_v57  ;;  %v1201_v53 = vrot.slane %v1188_v36, %v1780_v51  ;;  %vm1226_vm11 = vcmask 1041408  }
 0x345   :  { %1459 = vmatmul.mubr.msk.f32.vlgmr.msra.gmra.mrb[0].mxu1 %vm843_vm12, %v842_v44  ;;  %v2043_v54 = vsel %vm1306_vm5, %v1335_v29, 0.0  ;;  %vm1398_vm10 = vcmask 13324  }
 0x346   :  { %1499 = vmatpush3.bf16.msra.mxu1 %v1938_v52  ;;  %1469 = vmatprep.mubr.msk.f32.mxu1 %vm843_vm12, %v1025_v39  ;;  %v1437_v52 = vld [vmem:[%s2091_s1 + $0x2] sm:$0x3]  ;;  %s1559_s1 = smov 1  }
 0x347   :  { %1430 = vmatmul.mubr.msk.f32.gmra.mrb[2].mxu0 %vm843_vm12, %v842_v44  ;;  %1501 = vmatprep.subr.bf16.mxu1 %v1500_v46  ;;  %v1362_v41 = vmul.f32 %v1437_v52, %v1437_v52 }
 0x348   :  { %1495 = vmatpush1.bf16.msra.mxu0 %v1494_v58  ;;  %1100 = vmatprep.mubr.f32.mxu0 %v1557_v3 }
 0x349   :  { %v1363_v60 = vsel %vm1306_vm5, %v1362_v41, 0.0 }
 0x34a   :  { %1503 = vmatpush3.bf16.msra.mxu1 %v1500_v46  ;;  %1364 = vadd.xlane.f32.xlu0 %v1363_v60 }
 0x34b   :  { %1433 = vmatmul.mubr.msk.f32.vlgmr.msra.gmra.mrb[0].mxu0 %vm843_vm12, %v1025_v39 }
 0x34c   :  { %1106 = vmatprep.mubr.f32.mxu0 %v1557_v3  ;;  %v1305_v3 = vmul.f32 %v1437_v52, %v1211_v1 }
 0x34d   :  { %1470 = vmatmul.mubr.msk.f32.vlgmr.msra.gmra.mrb[0].mxu1 %vm843_vm12, %v1031_v61 }
 0x34e   :  { %v2045_v4 = vsel %vm1306_vm5, %v1305_v3, 0.0 }
 0x34f   :  { %1434 = vmatmul.mubr.msk.f32.gmra.mrb[2].mxu0 %vm843_vm12, %v1031_v61 }
 0x41e   :  { %v1102_v12 = vpop.f32.mrb[0].mxu0 }
 0x41f   :  { %v1205_v37 = vadd.f32 %v1193_v11, %v1102_v12  ;;  %v1104_v0 = vpop.f32.mrb[1].mxu0 }
 0x420   :  { %v1206_v63 = vadd.f32 %v1197_v26, %v1104_v0  ;;  %v1471_v5 = vpop.f32.mrb[0].mxu1 }
 0x421   :  { %v1217_v30 = vrot.slane %v1205_v37, 2  ;;  %v1234_v9 = vmul.f32 %v1205_v37, %v1205_v37  ;;  %v1210_v18 = vadd.f32 %v1471_v5, %v1201_v53  ;;  %v1179_v15 = vpop.f32.mrb[1].mxu1 }
 0x422   :  { %v1218_v62 = vrot.slane %v1206_v63, 2  ;;  %v1235_v43 = vmul.f32 %v1206_v63, %v1206_v63  ;;  %v1108_v22 = vpop.f32.mrb[2].mxu0  ;;  %v1207_v7 = vadd.f32 %v1201_v53, %v1179_v15 }
 0x423   :  { %v1223_v49 = vmul.f32 %v1217_v30, %v1205_v37  ;;  %v1208_v8 = vadd.f32 %v1193_v11, %v1108_v22  ;;  %v1287_v51 = vrot.slane %v1210_v18, 2  ;;  %v1110_v50 = vpop.f32.mrb[3].mxu0  ;;  %v1344_v23 = vsel %vm1343_vm8, %v1234_v9, 0.0 }
 0x424   :  { %v1224_v2 = vmul.f32 %v1218_v62, %v1206_v63  ;;  %v1209_v32 = vadd.f32 %v1197_v26, %v1110_v50  ;;  %v1219_v59 = vrot.slane %v1207_v7, 2  ;;  %v1236_v10 = vmul.f32 %v1207_v7, %v1207_v7 }
 0x425   :  { %v1285_v24 = vrot.slane %v1208_v8, 2  ;;  %v1321_v56 = vmul.f32 %v1208_v8, %v1208_v8  ;;  %v1345_v48 = vsel %vm1343_vm8, %v1235_v43, 0.0  ;;  %v1323_v16 = vmul.f32 %v1210_v18, %v1210_v18 }
 0x426   :  { %v1286_v25 = vrot.slane %v1209_v32, 2  ;;  %v1322_v21 = vmul.f32 %v1209_v32, %v1209_v32  ;;  %v1346_v27 = vadd.f32 %v1345_v48, %v1344_v23  ;;  %v1347_v14 = vsel %vm1343_vm8, %v1236_v10, 0.0 }
 0x427   :  { %v1291_v17 = vmul.f32 %v1285_v24, %v1208_v8  ;;  %v1324_v19 = vsel %vm1226_vm11, %v1321_v56, 0.0  ;;  %v1327_v28 = vsel %vm1226_vm11, %v1323_v16, 0.0  ;;  %v1351_v20 = vsel %vm1252_vm13, %v1321_v56, 0.0 }
 0x428   :  { %v1292_v33 = vmul.f32 %v1286_v25, %v1209_v32  ;;  %v1348_v6 = vadd.f32 %v1347_v14, %v1346_v27  ;;  %v1325_v31 = vsel %vm1226_vm11, %v1322_v21, 0.0  ;;  %v1352_v34 = vsel %vm1252_vm13, %v1322_v21, 0.0 }
 0x429   :  { %v1326_v35 = vadd.f32 %v1325_v31, %v1324_v19  ;;  %v1353_v45 = vadd.f32 %v1352_v34, %v1351_v20  ;;  %v1354_v40 = vsel %vm1252_vm13, %v1323_v16, 0.0  ;;  %v1314_v44 = vsel %vm1274_vm14, %v1234_v9, 0.0 }
 0x42a   :  { %1349 = vadd.xlane.f32.xlu0 %v1348_v6  ;;  %v1315_v46 = vsel %vm1274_vm14, %v1235_v43, 0.0  ;;  %v1317_v47 = vsel %vm1274_vm14, %v1236_v10, 0.0  ;;  %v1293_v58 = vmul.f32 %v1287_v51, %v1210_v18  ;;  %v1294_v55 = vsel %vm1226_vm11, %v1291_v17, 0.0 }
 0x42b   :  { %v1328_v13 = vadd.f32 %v1327_v28, %v1326_v35  ;;  %v1355_v39 = vadd.f32 %v1354_v40, %v1353_v45  ;;  %v1316_v38 = vadd.f32 %v1315_v46, %v1314_v44  ;;  %v1295_v42 = vsel %vm1226_vm11, %v1292_v33, 0.0 }
 0x42c   :  { %v1296_v57 = vadd.f32 %v1295_v42, %v1294_v55  ;;  %v1297_v61 = vsel %vm1226_vm11, %v1293_v58, 0.0  ;;  %v1225_v52 = vmul.f32 %v1219_v59, %v1207_v7  ;;  %v1275_v41 = vsel %vm1274_vm14, %v1223_v49, 0.0 }
 0x42d   :  { %1329 = vadd.xlane.f32.xlu1 %v1328_v13  ;;  %v1318_v60 = vadd.f32 %v1317_v47, %v1316_v38  ;;  %v1276_v1 = vsel %vm1274_vm14, %v1224_v2, 0.0  ;;  %v1253_v29 = vsel %vm1252_vm13, %v1234_v9, 0.0  ;;  %v1254_v3 = vsel %vm1252_vm13, %v1235_v43, 0.0 }
 0x42e   :  { %1356 = vadd.xlane.f32.xlu0 %v1355_v39  ;;  %v1298_v36 = vadd.f32 %v1297_v61, %v1296_v57  ;;  %v1277_v11 = vadd.f32 %v1276_v1, %v1275_v41  ;;  %v1278_v26 = vsel %vm1274_vm14, %v1225_v52, 0.0  ;;  %v1255_v53 = vadd.f32 %v1254_v3, %v1253_v29 }
 0x42f   :  { %v1256_v12 = vsel %vm1252_vm13, %v1236_v10, 0.0  ;;  %v1237_v37 = vsel %vm1226_vm11, %v1234_v9, 0.0  ;;  %v1238_v0 = vsel %vm1226_vm11, %v1235_v43, 0.0  ;;  %v1240_v63 = vsel %vm1226_vm11, %v1236_v10, 0.0  ;;  %v1365_v9 = vpop.xlane.xlu0 %1364 }
 0x430   :  { %v1279_v5 = vadd.f32 %v1278_v26, %v1277_v11  ;;  %v1257_v30 = vadd.f32 %v1256_v12, %v1255_v53  ;;  %v1239_v18 = vadd.f32 %v1238_v0, %v1237_v37  ;;  %v1227_v15 = vsel %vm1226_vm11, %v1223_v49, 0.0 }
 0x431   :  { %1319 = vadd.xlane.f32.xlu1 %v1318_v60  ;;  %v1228_v62 = vsel %vm1226_vm11, %v1224_v2, 0.0  ;;  %v1230_v22 = vsel %vm1226_vm11, %v1225_v52, 0.0  ;;  %v1367_v2 = vrot.slane %v1365_v9, 2 }
 0x432   :  { %1337 = vadd.xlane.f32.xlu0 %v2043_v54  ;;  %v1241_v7 = vadd.f32 %v1240_v63, %v1239_v18  ;;  %v1229_v8 = vadd.f32 %v1228_v62, %v1227_v15 }
 0x434   :  { %v1231_v51 = vadd.f32 %v1230_v22, %v1229_v8 }
 0x435   :  { %1299 = vadd.xlane.f32.xlu1 %v1298_v36 }
 0x436   :  { %1280 = vadd.xlane.f32.xlu0 %v1279_v5 }
 0x439   :  { %1308 = vadd.xlane.f32.xlu1 %v2045_v4 }
 0x43a   :  { %1258 = vadd.xlane.f32.xlu0 %v1257_v30 }
 0x43d   :  { %1242 = vadd.xlane.f32.xlu1 %v1241_v7 }
 0x43e   :  { %1232 = vadd.xlane.f32.xlu0 %v1231_v51 }
 0x4b7   :  { %v1350_v43 = vpop.xlane.xlu0 %1349 }
 0x4ba   :  { %v1330_v49 = vpop.xlane.xlu1 %1329 }
 0x4bb   :  { %v1357_v50 = vpop.xlane.xlu0 %1356  ;;  %v1332_v32 = vrot.slane %v1330_v49, 4 }
 0x4bc   :  { %v1359_v23 = vrot.slane %v1357_v50, 4 }
 0x4be   :  { %v1361_v59 = vadd.f32 %v1359_v23, %v1350_v43  ;;  %v1320_v10 = vpop.xlane.xlu1 %1319 }
 0x4bf   :  { %v1338_v54 = vpop.xlane.xlu0 %1337  ;;  %v1334_v56 = vadd.f32 %v1332_v32, %v1320_v10 }
 0x4c0   :  { %v1369_v24 = vadd.f32 %v1367_v2, %v1361_v59  ;;  %v1340_v48 = vrot.slane %v1338_v54, 4 }
 0x4c2   :  { %1543 = vrsqrt.f32 %v1369_v24  ;;  %v1342_v16 = vadd.f32 %v1340_v48, %v1334_v56  ;;  %v1300_v25 = vpop.xlane.xlu1 %1299  ;;  %vm1380_vm15 = vcmp.eq.f32.partialorder %v1369_v24, inf  ;;  %v1383_v20 = vand.u32 2147483648, %v1369_v24 }
 0x4c3   :  { %v1281_v4 = vpop.xlane.xlu0 %1280  ;;  %vm1382_vm0 = vcmp.eq.f32.partialorder %v1369_v24, 0.0  ;;  %v1302_v29 = vrot.slane %v1300_v25, 4 }
 0x4c4   :  { %1545 = vrsqrt.f32 %v1342_v16  ;;  %vm1372_vm1 = vcmp.eq.f32.partialorder %v1342_v16, inf  ;;  %v1375_v31 = vand.u32 2147483648, %v1342_v16  ;;  %vm1374_vm2 = vcmp.eq.f32.partialorder %v1342_v16, 0.0 }
 0x4c5   :  { %v1304_v26 = vadd.f32 %v1302_v29, %v1281_v4 }
 0x4c6   :  { %v1309_v21 = vpop.xlane.xlu1 %1308 }
 0x4c7   :  { %v1259_v27 = vpop.xlane.xlu0 %1258  ;;  %v1311_v36 = vrot.slane %v1309_v21, 4 }
 0x4c8   :  { %1547 = vrsqrt.f32 %v1259_v27  ;;  %vm1262_vm3 = vcmp.eq.f32.partialorder %v1259_v27, inf  ;;  %v1265_v55 = vand.u32 2147483648, %v1259_v27  ;;  %vm1264_vm4 = vcmp.eq.f32.partialorder %v1259_v27, 0.0 }
 0x4c9   :  { %v1313_v53 = vadd.f32 %v1311_v36, %v1304_v26 }
 0x4ca   :  { %v1243_v14 = vpop.xlane.xlu1 %1242 }
 0x4cb   :  { %1549 = vrsqrt.f32 %v1243_v14  ;;  %vm1246_vm6 = vcmp.eq.f32.partialorder %v1243_v14, inf  ;;  %v1249_v52 = vand.u32 2147483648, %v1243_v14  ;;  %vm1248_vm7 = vcmp.eq.f32.partialorder %v1243_v14, 0.0  ;;  %v1233_v63 = vpop.xlane.xlu0 %1232 }
 0x4cc   :  { %v1544_v17 = vpop.eup %1543 }
 0x4cd   :  { %v1379_v19 = vmul.f32 %v1544_v17, %v1369_v24 }
 0x4ce   :  { %v1546_v28 = vpop.eup %1545 }
 0x4cf   :  { %v1371_v33 = vmul.f32 %v1546_v28, %v1342_v16  ;;  %v1381_v6 = vsel %vm1380_vm15, %v1369_v24, %v1379_v19 }
 0x4d0   :  { %v1384_v34 = vsel %vm1382_vm0, %v1383_v20, %v1381_v6 }
 0x4d1   :  { %v1373_v35 = vsel %vm1372_vm1, %v1342_v16, %v1371_v33  ;;  %v1385_v45 = vmax.f32 %v1384_v34, 1e-08 }
 0x4d2   :  { %v1548_v40 = vpop.eup %1547  ;;  %v1376_v44 = vsel %vm1374_vm2, %v1375_v31, %v1373_v35 }
 0x4d3   :  { %v1261_v46 = vmul.f32 %v1548_v40, %v1259_v27  ;;  %v1377_v47 = vmax.f32 %v1376_v44, 1e-08  ;;  %v1387_v58 = vrot.slane %v1385_v45, 2 }
 0x4d5   :  { %v1550_v13 = vpop.eup %1549  ;;  %v1263_v39 = vsel %vm1262_vm3, %v1259_v27, %v1261_v46  ;;  %v1389_v38 = vmul.f32 %v1387_v58, %v1377_v47 }
 0x4d6   :  { %v1266_v42 = vsel %vm1264_vm4, %v1265_v55, %v1263_v39  ;;  %v1245_v57 = vmul.f32 %v1550_v13, %v1243_v14 }
 0x4d7   :  { %v1267_v61 = vmax.f32 %v1266_v42, 1e-08  ;;  %1551 = vrcp.f32 %v1389_v38 }
 0x4d8   :  { %v1247_v41 = vsel %vm1246_vm6, %v1243_v14, %v1245_v57 }
 0x4d9   :  { %v1250_v60 = vsel %vm1248_vm7, %v1249_v52, %v1247_v41  ;;  %v1269_v1 = vrot.slane %v1267_v61, 2 }
 0x4da   :  { %v1251_v3 = vmax.f32 %v1250_v60, 1e-08 }
 0x4dc   :  { %v1271_v11 = vmul.f32 %v1269_v1, %v1251_v3 }
 0x4de   :  { %1553 = vrcp.f32 %v1271_v11 }
 0x4e1   :  { %v1552_v12 = vpop.eup %1551 }
 0x4e2   :  { %v1391_v37 = vmul.f32 %v1552_v12, %v1313_v53 }
 0x4e4   :  { %1395 = vrot.lane.b32.xlu1 %v1391_v37, %s1559_s1 }
 0x4e8   :  { %v1554_v0 = vpop.eup %1553 }
 0x4e9   :  { %v1273_v5 = vmul.f32 %v1554_v0, %v1233_v63 }
 0x4eb   :  { %1393 = vst.msk [vmem:[%s2093_s5] sm:$0x3] %vm1392_vm9, %v1273_v5 }
 0x556   :  { %v1396_v30 = vpop.permute.xlu1 %1395 }
 0x557   :  { %1399 = vst.msk [vmem:[%s2093_s5 - $0x4] sm:$0x30] %vm1398_vm10, %v1396_v30 }

</bundles_post_ra>
